<compile_context>
chip_gen: v5e
topology: v5e:2x2
jax: 0.10.0
libtpu: 0.0.40
codegen_flags: <defaults>
</compile_context>

<pallas_src>
import jax
import jax.numpy as jnp
from jax import lax
from jax.experimental import pallas as pl
from jax.experimental.pallas import tpu as pltpu

TM = 256  # batch tile: multiple of 128 (lane-dense output) and of 16 (bf16 sublanes)


def _mlp_kernel(x_ref, w1_ref, b1_ref, w2_ref, b2_ref, w3_ref, b3_ref,
                w4_ref, b4_ref, o_ref):
    """Fused 4-layer MLP on one (TM, INPUT_DIM) batch tile.

    bf16 MXU operands, f32 accumulation. Weights are resident in VMEM across the grid.
    """
    x = x_ref[...]  # (TM, INPUT_DIM) bf16

    h = jnp.dot(x, w1_ref[...], preferred_element_type=jnp.float32) + b1_ref[...]
    h = jnp.maximum(h, 0.0)

    h = jnp.dot(h.astype(jnp.bfloat16), w2_ref[...],
                preferred_element_type=jnp.float32) + b2_ref[...]
    h = jnp.maximum(h, 0.0)

    h = jnp.dot(h.astype(jnp.bfloat16), w3_ref[...],
                preferred_element_type=jnp.float32) + b3_ref[...]
    h = jnp.maximum(h, 0.0)

    # Final layer: (1, DIM) @ (TM, DIM)^T -> (1, TM). Output comes out of the MXU
    # already lane-dense (batch on lanes), avoiding masked (TM, 1) partial stores.
    out = lax.dot_general(
        w4_ref[...], h.astype(jnp.bfloat16),
        dimension_numbers=(((1,), (1,)), ((), ())),
        preferred_element_type=jnp.float32,
    )
    o_ref[...] = (out + b4_ref[0, 0]).astype(o_ref.dtype)


def discriminator_time_forward(x, params, batch_size, input_dim, *, tm=TM):
    """Pallas equivalent of DiscriminatorTime.forward.

    x: any shape that flattens to (batch_size, input_dim)  (mirrors .view()).
    params: dict with w1..w3 (in,out) bf16, w4 (1,DIM) bf16, b1..b3 (1,DIM) f32,
            b4 (1,1) f32.
    Returns a 1-D f32 array of shape (batch_size,).
    """
    x2d = jnp.reshape(x, (batch_size, input_dim)).astype(jnp.bfloat16)

    # Pad batch up to a multiple of the tile so every grid step is a full tile.
    b_pad = pl.cdiv(batch_size, tm) * tm
    if b_pad != batch_size:
        x2d = jnp.pad(x2d, ((0, b_pad - batch_size), (0, 0)))

    w1, b1 = params["w1"], params["b1"]
    w2, b2 = params["w2"], params["b2"]
    w3, b3 = params["w3"], params["b3"]
    w4, b4 = params["w4"], params["b4"]

    resident = lambda a: pl.BlockSpec(a.shape, lambda i: (0, 0))  # stays in VMEM

    out = pl.pallas_call(
        _mlp_kernel,
        out_shape=jax.ShapeDtypeStruct((1, b_pad), jnp.float32),
        grid=(b_pad // tm,),
        in_specs=[
            pl.BlockSpec((tm, input_dim), lambda i: (i, 0)),          # x tile
            resident(w1), resident(b1),
            resident(w2), resident(b2),
            resident(w3), resident(b3),
            resident(w4),
            pl.BlockSpec(memory_space=pltpu.MemorySpace.SMEM),        # b4 scalar
        ],
        out_specs=pl.BlockSpec((1, tm), lambda i: (0, i)),            # lane-dense out
        compiler_params=pltpu.CompilerParams(
            dimension_semantics=("parallel",),                        # megacore split on v7x
        ),
    )(x2d, w1, b1, w2, b2, w3, b3, w4, b4)

    return out[0, :batch_size]  # .view(-1)


def init_params(key, dim, input_dim):
    """Deterministic synthetic init matching nn.Linear shapes (weights stored (in,out))."""
    ks = jax.random.split(key, 8)

    def linear(kw, kb, fan_in, fan_out):
        bound = 1.0 / (fan_in ** 0.5)
        w = jax.random.uniform(kw, (fan_in, fan_out), jnp.float32, -bound, bound)
        b = jax.random.uniform(kb, (1, fan_out), jnp.float32, -bound, bound)
        return w, b

    w1, b1 = linear(ks[0], ks[1], input_dim, dim)
    w2, b2 = linear(ks[2], ks[3], dim, dim)
    w3, b3 = linear(ks[4], ks[5], dim, dim)
    w4c, b4 = linear(ks[6], ks[7], dim, 1)          # (dim, 1), (1, 1)

    return dict(
        w1=w1.astype(jnp.bfloat16), b1=b1,
        w2=w2.astype(jnp.bfloat16), b2=b2,
        w3=w3.astype(jnp.bfloat16), b3=b3,
        w4=w4c.T.astype(jnp.bfloat16),              # (1, dim): row form for the trans_b matmul
        b4=b4,                                      # (1, 1) f32, lives in SMEM
    )


def _reference_forward(x, params, batch_size, input_dim):
    """Pure-JAX reference with the same bf16-operand / f32-accumulation precision."""
    h = jnp.reshape(x, (batch_size, input_dim)).astype(jnp.bfloat16)
    h = jnp.maximum(jnp.dot(h, params["w1"],
                            preferred_element_type=jnp.float32) + params["b1"], 0.0)
    h = jnp.maximum(jnp.dot(h.astype(jnp.bfloat16), params["w2"],
                            preferred_element_type=jnp.float32) + params["b2"], 0.0)
    h = jnp.maximum(jnp.dot(h.astype(jnp.bfloat16), params["w3"],
                            preferred_element_type=jnp.float32) + params["b3"], 0.0)
    out = jnp.dot(h.astype(jnp.bfloat16), params["w4"].T,
                  preferred_element_type=jnp.float32) + params["b4"]
    return jnp.reshape(out, (-1,))


if __name__ == "__main__":
    DIM = 32          # hidden width
    INPUT_DIM = 16    # flattened input features

    key = jax.random.PRNGKey(0)
    kx, kp = jax.random.split(key)
    params = init_params(kp, DIM, INPUT_DIM)

    # batch=8: tiny batch padded into a single tile; batch=512: 2-step batch grid
    # exercising the pipelined / parallel path.
    for batch_size in (8, 512):
        x = jax.random.normal(jax.random.fold_in(kx, batch_size),
                              (batch_size, INPUT_DIM), jnp.float32)

        out = jax.block_until_ready(
            discriminator_time_forward(x, params, batch_size, INPUT_DIM))
        ref = _reference_forward(x, params, batch_size, INPUT_DIM)

        assert out.shape == (batch_size,)
        assert jnp.allclose(out, ref, atol=5e-3, rtol=5e-3), \
            f"mismatch vs JAX reference at batch={batch_size}"

    print("KERNEL_OK")
</pallas_src>

<mosaic_0001>
module attributes {stable_mosaic.version = 11 : i64} {
  func.func @_mlp_kernel(%arg0: i32, %arg1: memref<256x16xbf16, #tpu.memory_space<vmem>>, %arg2: memref<16x32xbf16, #tpu.memory_space<vmem>>, %arg3: memref<1x32xf32, #tpu.memory_space<vmem>>, %arg4: memref<32x32xbf16, #tpu.memory_space<vmem>>, %arg5: memref<1x32xf32, #tpu.memory_space<vmem>>, %arg6: memref<32x32xbf16, #tpu.memory_space<vmem>>, %arg7: memref<1x32xf32, #tpu.memory_space<vmem>>, %arg8: memref<1x32xbf16, #tpu.memory_space<vmem>>, %arg9: memref<1x1xf32, #tpu.memory_space<smem>>, %arg10: memref<1x256xf32, #tpu.memory_space<vmem>>) attributes {dimension_semantics = [#tpu.dimension_semantics<parallel>], iteration_bounds = array<i64: 1>, scalar_prefetch = 0 : i64, scratch_operands = 0 : i64, tpu.core_type = #tpu.core_type<tc>, window_params = [{transform_indices = @transform_0, window_bounds = array<i64: 256, 16>}, {pipeline_mode = #tpu.pipeline_mode<synchronous>, transform_indices = @transform_1, window_bounds = array<i64: 16, 32>}, {pipeline_mode = #tpu.pipeline_mode<synchronous>, transform_indices = @transform_2, window_bounds = array<i64: 1, 32>}, {pipeline_mode = #tpu.pipeline_mode<synchronous>, transform_indices = @transform_3, window_bounds = array<i64: 32, 32>}, {pipeline_mode = #tpu.pipeline_mode<synchronous>, transform_indices = @transform_4, window_bounds = array<i64: 1, 32>}, {pipeline_mode = #tpu.pipeline_mode<synchronous>, transform_indices = @transform_5, window_bounds = array<i64: 32, 32>}, {pipeline_mode = #tpu.pipeline_mode<synchronous>, transform_indices = @transform_6, window_bounds = array<i64: 1, 32>}, {pipeline_mode = #tpu.pipeline_mode<synchronous>, transform_indices = @transform_7, window_bounds = array<i64: 1, 32>}, {transform_indices = @transform_8, window_bounds = array<i64: 1, 1>}, {transform_indices = @transform_9, window_bounds = array<i64: 1, 256>}]} {
    %c0 = arith.constant 0 : index
    %c0_0 = arith.constant 0 : index
    %0 = vector.load %arg1[%c0, %c0_0] : memref<256x16xbf16, #tpu.memory_space<vmem>>, vector<256x16xbf16>
    %c0_1 = arith.constant 0 : index
    %c0_2 = arith.constant 0 : index
    %1 = vector.load %arg2[%c0_1, %c0_2] : memref<16x32xbf16, #tpu.memory_space<vmem>>, vector<16x32xbf16>
    %cst = arith.constant dense<0.000000e+00> : vector<256x32xf32>
    %2 = tpu.matmul %0, %1, %cst {dimension_numbers = #tpu.dot_dimension_numbers<[1], [0], [0], [1], [0, 0, 1, 1], [], []>} : vector<256x16xbf16>, vector<16x32xbf16>, vector<256x32xf32> -> vector<256x32xf32>
    %c0_3 = arith.constant 0 : index
    %c0_4 = arith.constant 0 : index
    %3 = vector.load %arg3[%c0_3, %c0_4] : memref<1x32xf32, #tpu.memory_space<vmem>>, vector<1x32xf32>
    %4 = vector.broadcast %3 : vector<1x32xf32> to vector<256x32xf32>
    %5 = arith.addf %2, %4 : vector<256x32xf32>
    %cst_5 = arith.constant 0.000000e+00 : f32
    %6 = vector.broadcast %cst_5 : f32 to vector<256x32xf32>
    %7 = arith.maximumf %5, %6 : vector<256x32xf32>
    %8 = arith.truncf %7 : vector<256x32xf32> to vector<256x32xbf16>
    %c0_6 = arith.constant 0 : index
    %c0_7 = arith.constant 0 : index
    %9 = vector.load %arg4[%c0_6, %c0_7] : memref<32x32xbf16, #tpu.memory_space<vmem>>, vector<32x32xbf16>
    %cst_8 = arith.constant dense<0.000000e+00> : vector<256x32xf32>
    %10 = tpu.matmul %8, %9, %cst_8 {dimension_numbers = #tpu.dot_dimension_numbers<[1], [0], [0], [1], [0, 0, 1, 1], [], []>} : vector<256x32xbf16>, vector<32x32xbf16>, vector<256x32xf32> -> vector<256x32xf32>
    %c0_9 = arith.constant 0 : index
    %c0_10 = arith.constant 0 : index
    %11 = vector.load %arg5[%c0_9, %c0_10] : memref<1x32xf32, #tpu.memory_space<vmem>>, vector<1x32xf32>
    %12 = vector.broadcast %11 : vector<1x32xf32> to vector<256x32xf32>
    %13 = arith.addf %10, %12 : vector<256x32xf32>
    %cst_11 = arith.constant 0.000000e+00 : f32
    %14 = vector.broadcast %cst_11 : f32 to vector<256x32xf32>
    %15 = arith.maximumf %13, %14 : vector<256x32xf32>
    %16 = arith.truncf %15 : vector<256x32xf32> to vector<256x32xbf16>
    %c0_12 = arith.constant 0 : index
    %c0_13 = arith.constant 0 : index
    %17 = vector.load %arg6[%c0_12, %c0_13] : memref<32x32xbf16, #tpu.memory_space<vmem>>, vector<32x32xbf16>
    %cst_14 = arith.constant dense<0.000000e+00> : vector<256x32xf32>
    %18 = tpu.matmul %16, %17, %cst_14 {dimension_numbers = #tpu.dot_dimension_numbers<[1], [0], [0], [1], [0, 0, 1, 1], [], []>} : vector<256x32xbf16>, vector<32x32xbf16>, vector<256x32xf32> -> vector<256x32xf32>
    %c0_15 = arith.constant 0 : index
    %c0_16 = arith.constant 0 : index
    %19 = vector.load %arg7[%c0_15, %c0_16] : memref<1x32xf32, #tpu.memory_space<vmem>>, vector<1x32xf32>
    %20 = vector.broadcast %19 : vector<1x32xf32> to vector<256x32xf32>
    %21 = arith.addf %18, %20 : vector<256x32xf32>
    %cst_17 = arith.constant 0.000000e+00 : f32
    %22 = vector.broadcast %cst_17 : f32 to vector<256x32xf32>
    %23 = arith.maximumf %21, %22 : vector<256x32xf32>
    %c0_18 = arith.constant 0 : index
    %c0_19 = arith.constant 0 : index
    %24 = vector.load %arg8[%c0_18, %c0_19] : memref<1x32xbf16, #tpu.memory_space<vmem>>, vector<1x32xbf16>
    %25 = arith.truncf %23 : vector<256x32xf32> to vector<256x32xbf16>
    %cst_20 = arith.constant dense<0.000000e+00> : vector<1x256xf32>
    %26 = tpu.matmul %24, %25, %cst_20 {dimension_numbers = #tpu.dot_dimension_numbers<[1], [1], [0], [0], [0, 0, 1, 0], [], []>} : vector<1x32xbf16>, vector<256x32xbf16>, vector<1x256xf32> -> vector<1x256xf32>
    %c0_21 = arith.constant 0 : index
    %c0_22 = arith.constant 0 : index
    %27 = memref.load %arg9[%c0_21, %c0_22] : memref<1x1xf32, #tpu.memory_space<smem>>
    %28 = vector.broadcast %27 : f32 to vector<1x256xf32>
    %29 = arith.addf %26, %28 : vector<1x256xf32>
    %c0_23 = arith.constant 0 : index
    %c0_24 = arith.constant 0 : index
    %30 = vector.load %arg10[%c0_23, %c0_24] : memref<1x256xf32, #tpu.memory_space<vmem>>, vector<1x256xf32>
    tpu.vector_store %arg10[%c0_23, %c0_24], %29 {strides = array<i32>} : memref<1x256xf32, #tpu.memory_space<vmem>>, vector<1x256xf32>,
    return
  }
  func.func @transform_0(%arg0: i32) -> (i32, i32) {
    %c0_i32 = arith.constant 0 : i32
    %c0_i32_0 = arith.constant 0 : i32
    return %arg0, %c0_i32 : i32, i32
  }
  func.func @transform_1(%arg0: i32) -> (i32, i32) {
    %c0_i32 = arith.constant 0 : i32
    %c0_i32_0 = arith.constant 0 : i32
    %c0_i32_1 = arith.constant 0 : i32
    return %c0_i32, %c0_i32_0 : i32, i32
  }
  func.func @transform_2(%arg0: i32) -> (i32, i32) {
    %c0_i32 = arith.constant 0 : i32
    %c0_i32_0 = arith.constant 0 : i32
    %c0_i32_1 = arith.constant 0 : i32
    return %c0_i32, %c0_i32_0 : i32, i32
  }
  func.func @transform_3(%arg0: i32) -> (i32, i32) {
    %c0_i32 = arith.constant 0 : i32
    %c0_i32_0 = arith.constant 0 : i32
    %c0_i32_1 = arith.constant 0 : i32
    return %c0_i32, %c0_i32_0 : i32, i32
  }
  func.func @transform_4(%arg0: i32) -> (i32, i32) {
    %c0_i32 = arith.constant 0 : i32
    %c0_i32_0 = arith.constant 0 : i32
    %c0_i32_1 = arith.constant 0 : i32
    return %c0_i32, %c0_i32_0 : i32, i32
  }
  func.func @transform_5(%arg0: i32) -> (i32, i32) {
    %c0_i32 = arith.constant 0 : i32
    %c0_i32_0 = arith.constant 0 : i32
    %c0_i32_1 = arith.constant 0 : i32
    return %c0_i32, %c0_i32_0 : i32, i32
  }
  func.func @transform_6(%arg0: i32) -> (i32, i32) {
    %c0_i32 = arith.constant 0 : i32
    %c0_i32_0 = arith.constant 0 : i32
    %c0_i32_1 = arith.constant 0 : i32
    return %c0_i32, %c0_i32_0 : i32, i32
  }
  func.func @transform_7(%arg0: i32) -> (i32, i32) {
    %c0_i32 = arith.constant 0 : i32
    %c0_i32_0 = arith.constant 0 : i32
    %c0_i32_1 = arith.constant 0 : i32
    return %c0_i32, %c0_i32_0 : i32, i32
  }
  func.func @transform_8(%arg0: i32) -> (i32, i32) {
    %c0_i32 = arith.constant 0 : i32
    %c0_i32_0 = arith.constant 0 : i32
    %c0_i32_1 = arith.constant 0 : i32
    return %c0_i32, %c0_i32_0 : i32, i32
  }
  func.func @transform_9(%arg0: i32) -> (i32, i32) {
    %c0_i32 = arith.constant 0 : i32
    %c0_i32_0 = arith.constant 0 : i32
    return %c0_i32, %arg0 : i32, i32
  }
}

</mosaic_0001>

<bundles_post_ra>
// kernel: tpu_custom_call.1
= control target key start
LH: loop header
LB: loop body
LE: loop exit
PB: predicated region body
PF: predicated region fallthrough
CT: control target
= control target key end

     0   :  { %vm159_vm0 = vcmask 130048   ;;  %s1366_s0 = inlined_call_operand.vmem [shape: bf16[256,16], index: 0, kind: input, shape index: {}]   ;;  %s1367_s1 = inlined_call_operand.vmem [shape: bf16[16,32], index: 1, kind: input, shape index: {}]   ;;  %s1368_s2 = inlined_call_operand.vmem [shape: f32[1,32], index: 2, kind: input, shape index: {}]   ;;  %s1369_s3 = inlined_call_operand.vmem [shape: bf16[32,32], index: 3, kind: input, shape index: {}]   ;;  %s1370_s4 = inlined_call_operand.vmem [shape: f32[1,32], index: 4, kind: input, shape index: {}]   ;;  %s1371_s5 = inlined_call_operand.vmem [shape: bf16[32,32], index: 5, kind: input, shape index: {}]   ;;  %s1372_s6 = inlined_call_operand.vmem [shape: f32[1,32], index: 6, kind: input, shape index: {}]   ;;  %s1373_s7 = inlined_call_operand.vmem [shape: bf16[1,32], index: 7, kind: input, shape index: {}]   ;;  %s1374_s8 = inlined_call_operand.<no memory space> [shape: f32[1,1], index: 8, kind: input, shape index: {}]   ;;  %s1375_s9 = inlined_call_operand.hbm [shape: f32[1,256], index: 9, kind: output, shape index: {}]  }
   0x1   :  { %v1013_v0 = vld [vmem:[%s1367_s1] sm:$0xff] }
   0x2   :  { %v997_v1 = vld [vmem:[%s1366_s0] sm:$0xff]  ;;  %215 = vmatpush.bf16.msra.mxu0 %v1013_v0 }
   0x3   :  { %15 = vsyncpa [#allocation4], 0  ;;  %v998_v2 = vld [vmem:[%s1366_s0 + $0x8] sm:$0xff]  ;;  %v999_v3 = vld [vmem:[%s1366_s0 + $0x10] sm:$0xff]  ;;  %vm365_vm1 = vcmask 261120   ;;  %s1048_s10 = smov [#allocation3]  }
   0x4   :  { %v1000_v4 = vld [vmem:[%s1366_s0 + $0x18] sm:$0xff]  ;;  %v1001_v5 = vld [vmem:[%s1366_s0 + $0x20] sm:$0xff]  ;;  %v1002_v6 = vld [vmem:[%s1366_s0 + $0x28] sm:$0xff]  ;;  %s852_s11 = sshll.u32 %s1048_s10, 4  ;;  %s854_s13 = sshll.u32 %s1375_s9, 4  ;;  %vm839_vm2 = vcmask 1040384   ;;  %s853_s11 = int_to_ptr.vmem [resolvable:$true] %s852_s11  ;;  %s855_s13 = int_to_ptr.hbm [resolvable:$true] %s854_s13 }
   0x5   :  { %931 = vmatmul.msk.bf16.vlgmr.msra.gmra.mxu0 %vm159_vm0, %v997_v1  ;;  %v1003_v7 = vld [vmem:[%s1366_s0 + $0x30] sm:$0xff]  ;;  %v1015_v8 = vld [vmem:[%s1369_s3 + $0x8] sm:$0xff]  ;;  %v1014_v9 = vld [vmem:[%s1369_s3] sm:$0xff] }
   0x6   :  { %420 = vmatpush.bf16.msra.mxu1 %v1015_v8  ;;  %v1004_v10 = vld [vmem:[%s1366_s0 + $0x38] sm:$0xff]  ;;  %v1005_v11 = vld [vmem:[%s1366_s0 + $0x40] sm:$0xff]  ;;  %v1006_v20 = vld [vmem:[%s1366_s0 + $0x48] sm:$0xff] }
   0x7   :  { %v1146_v13 = vld [vmem:[%s1368_s2] ss:$0 sm:$0xff]  ;;  %v1007_v28 = vld [vmem:[%s1366_s0 + $0x50] sm:$0xff]  ;;  %v1008_v36 = vld [vmem:[%s1366_s0 + $0x58] sm:$0xff] }
   0x8   :  { %v1009_v44 = vld [vmem:[%s1366_s0 + $0x60] sm:$0xff]  ;;  %v1010_v52 = vld [vmem:[%s1366_s0 + $0x68] sm:$0xff]  ;;  %v1011_v60 = vld [vmem:[%s1366_s0 + $0x70] sm:$0xff] }
   0xa   :  { %421 = vmatpush.bf16.msra.mxu1 %v1014_v9 }
  0x15   :  { %932 = vmatmul.msk.bf16.gmra.mxu0 %vm159_vm0, %v998_v2 }
  0x25   :  { %933 = vmatmul.msk.bf16.gmra.mxu0 %vm159_vm0, %v999_v3 }
  0x35   :  { %934 = vmatmul.msk.bf16.gmra.mxu0 %vm159_vm0, %v1000_v4  ;;  %v1012_v4 = vld [vmem:[%s1366_s0 + $0x78] sm:$0xff] }
  0x45   :  { %935 = vmatmul.msk.bf16.gmra.mxu0 %vm159_vm0, %v1001_v5 }
  0x55   :  { %936 = vmatmul.msk.bf16.gmra.mxu0 %vm159_vm0, %v1002_v6  ;;  %v1017_v6 = vld [vmem:[%s1371_s5 + $0x8] sm:$0xff] }
  0x56   :  { %625 = vmatpush.bf16.msra.mxu2 %v1017_v6 }
  0x65   :  { %937 = vmatmul.msk.bf16.gmra.mxu0 %vm159_vm0, %v1003_v7  ;;  %v1016_v7 = vld [vmem:[%s1371_s5] sm:$0xff] }
  0x66   :  { %626 = vmatpush.bf16.msra.mxu2 %v1016_v7 }
  0x75   :  { %938 = vmatmul.msk.bf16.gmra.mxu0 %vm159_vm0, %v1004_v10 }
  0x82   :  { %v217_v12 = vpop.f32.mrf.mxu0 }
  0x83   :  { %v218_v14 = vadd.f32 %v1146_v13, %v217_v12 }
  0x85   :  { %939 = vmatmul.msk.bf16.gmra.mxu0 %vm159_vm0, %v1005_v11  ;;  %v297_v17 = vmax.f32 %v218_v14, 0.0 }
  0x8a   :  { %v219_v15 = vpop.f32.mrf.mxu0 }
  0x8b   :  { %v220_v16 = vadd.f32 %v1146_v13, %v219_v15 }
  0x8d   :  { %v298_v18 = vmax.f32 %v220_v16, 0.0 }
  0x8f   :  { %v329_v19 = vpack.c.bf16 %v298_v18, %v297_v17 }
  0x91   :  { %955 = vmatmul.msk.bf16.vlgmr.msra.gmra.mxu1 %vm365_vm1, %v329_v19 }
  0x92   :  { %v222_v21 = vpop.f32.mrf.mxu0 }
  0x93   :  { %v223_v22 = vadd.f32 %v1146_v13, %v222_v21 }
  0x95   :  { %940 = vmatmul.msk.bf16.gmra.mxu0 %vm159_vm0, %v1006_v20  ;;  %v299_v25 = vmax.f32 %v223_v22, 0.0 }
  0x9a   :  { %v224_v23 = vpop.f32.mrf.mxu0 }
  0x9b   :  { %v225_v24 = vadd.f32 %v1146_v13, %v224_v23  ;;  %v1212_v23 = vld [vmem:[%s1370_s4] ss:$0 sm:$0xff] }
  0x9d   :  { %v300_v26 = vmax.f32 %v225_v24, 0.0 }
  0x9f   :  { %v330_v27 = vpack.c.bf16 %v300_v26, %v299_v25 }
  0xa1   :  { %956 = vmatmul.msk.bf16.gmra.mxu1 %vm365_vm1, %v330_v27 }
  0xa2   :  { %v227_v29 = vpop.f32.mrf.mxu0 }
  0xa3   :  { %v228_v30 = vadd.f32 %v1146_v13, %v227_v29 }
  0xa5   :  { %941 = vmatmul.msk.bf16.gmra.mxu0 %vm159_vm0, %v1007_v28  ;;  %v301_v33 = vmax.f32 %v228_v30, 0.0 }
  0xaa   :  { %v229_v31 = vpop.f32.mrf.mxu0 }
  0xab   :  { %v230_v32 = vadd.f32 %v1146_v13, %v229_v31 }
  0xad   :  { %v302_v34 = vmax.f32 %v230_v32, 0.0 }
  0xaf   :  { %v331_v35 = vpack.c.bf16 %v302_v34, %v301_v33 }
  0xb1   :  { %957 = vmatmul.msk.bf16.gmra.mxu1 %vm365_vm1, %v331_v35 }
  0xb2   :  { %v232_v37 = vpop.f32.mrf.mxu0 }
  0xb3   :  { %v233_v38 = vadd.f32 %v1146_v13, %v232_v37 }
  0xb5   :  { %942 = vmatmul.msk.bf16.gmra.mxu0 %vm159_vm0, %v1008_v36  ;;  %v303_v41 = vmax.f32 %v233_v38, 0.0 }
  0xba   :  { %v234_v39 = vpop.f32.mrf.mxu0 }
  0xbb   :  { %v235_v40 = vadd.f32 %v1146_v13, %v234_v39 }
  0xbd   :  { %v304_v42 = vmax.f32 %v235_v40, 0.0 }
  0xbf   :  { %v332_v43 = vpack.c.bf16 %v304_v42, %v303_v41 }
  0xc1   :  { %958 = vmatmul.msk.bf16.gmra.mxu1 %vm365_vm1, %v332_v43 }
  0xc2   :  { %v237_v45 = vpop.f32.mrf.mxu0 }
  0xc3   :  { %v238_v46 = vadd.f32 %v1146_v13, %v237_v45 }
  0xc5   :  { %943 = vmatmul.msk.bf16.gmra.mxu0 %vm159_vm0, %v1009_v44  ;;  %v305_v49 = vmax.f32 %v238_v46, 0.0 }
  0xca   :  { %v239_v47 = vpop.f32.mrf.mxu0 }
  0xcb   :  { %v240_v48 = vadd.f32 %v1146_v13, %v239_v47 }
  0xcd   :  { %v306_v50 = vmax.f32 %v240_v48, 0.0 }
  0xcf   :  { %v333_v51 = vpack.c.bf16 %v306_v50, %v305_v49 }
  0xd1   :  { %959 = vmatmul.msk.bf16.gmra.mxu1 %vm365_vm1, %v333_v51 }
  0xd2   :  { %v242_v53 = vpop.f32.mrf.mxu0 }
  0xd3   :  { %v243_v54 = vadd.f32 %v1146_v13, %v242_v53 }
  0xd5   :  { %944 = vmatmul.msk.bf16.gmra.mxu0 %vm159_vm0, %v1010_v52  ;;  %v307_v57 = vmax.f32 %v243_v54, 0.0 }
  0xda   :  { %v244_v55 = vpop.f32.mrf.mxu0 }
  0xdb   :  { %v245_v56 = vadd.f32 %v1146_v13, %v244_v55 }
  0xdd   :  { %v308_v58 = vmax.f32 %v245_v56, 0.0 }
  0xdf   :  { %v334_v59 = vpack.c.bf16 %v308_v58, %v307_v57 }
  0xe1   :  { %960 = vmatmul.msk.bf16.gmra.mxu1 %vm365_vm1, %v334_v59 }
  0xe2   :  { %v247_v61 = vpop.f32.mrf.mxu0 }
  0xe3   :  { %v248_v62 = vadd.f32 %v1146_v13, %v247_v61 }
  0xe5   :  { %945 = vmatmul.msk.bf16.gmra.mxu0 %vm159_vm0, %v1011_v60  ;;  %v309_v1 = vmax.f32 %v248_v62, 0.0 }
  0xea   :  { %v249_v63 = vpop.f32.mrf.mxu0 }
  0xeb   :  { %v250_v0 = vadd.f32 %v1146_v13, %v249_v63 }
  0xed   :  { %v310_v2 = vmax.f32 %v250_v0, 0.0 }
  0xef   :  { %v335_v3 = vpack.c.bf16 %v310_v2, %v309_v1 }
  0xf1   :  { %961 = vmatmul.msk.bf16.gmra.mxu1 %vm365_vm1, %v335_v3 }
  0xf2   :  { %v252_v5 = vpop.f32.mrf.mxu0 }
  0xf3   :  { %v253_v8 = vadd.f32 %v1146_v13, %v252_v5 }
  0xf5   :  { %946 = vmatmul.msk.bf16.gmra.mxu0 %vm159_vm0, %v1012_v4  ;;  %v311_v11 = vmax.f32 %v253_v8, 0.0 }
  0xfa   :  { %v254_v9 = vpop.f32.mrf.mxu0 }
  0xfb   :  { %v255_v10 = vadd.f32 %v1146_v13, %v254_v9 }
  0xfd   :  { %v312_v12 = vmax.f32 %v255_v10, 0.0 }
  0xff   :  { %v336_v14 = vpack.c.bf16 %v312_v12, %v311_v11 }
 0x101   :  { %962 = vmatmul.msk.bf16.gmra.mxu1 %vm365_vm1, %v336_v14 }
 0x102   :  { %v257_v15 = vpop.f32.mrf.mxu0 }
 0x103   :  { %v258_v16 = vadd.f32 %v1146_v13, %v257_v15 }
 0x105   :  { %v313_v19 = vmax.f32 %v258_v16, 0.0 }
 0x10a   :  { %v259_v17 = vpop.f32.mrf.mxu0 }
 0x10b   :  { %v260_v18 = vadd.f32 %v1146_v13, %v259_v17 }
 0x10d   :  { %v314_v20 = vmax.f32 %v260_v18, 0.0 }
 0x10e   :  { %v423_v21 = vpop.f32.mrf.mxu1 }
 0x10f   :  { %v337_v22 = vpack.c.bf16 %v314_v20, %v313_v19  ;;  %v424_v25 = vadd.f32 %v1212_v23, %v423_v21 }
 0x111   :  { %963 = vmatmul.msk.bf16.gmra.mxu1 %vm365_vm1, %v337_v22  ;;  %v503_v28 = vmax.f32 %v424_v25, 0.0 }
 0x112   :  { %v262_v24 = vpop.f32.mrf.mxu0 }
 0x113   :  { %v263_v29 = vadd.f32 %v1146_v13, %v262_v24 }
 0x115   :  { %v315_v34 = vmax.f32 %v263_v29, 0.0 }
 0x116   :  { %v425_v26 = vpop.f32.mrf.mxu1 }
 0x117   :  { %v426_v27 = vadd.f32 %v1212_v23, %v425_v26 }
 0x119   :  { %v504_v30 = vmax.f32 %v426_v27, 0.0 }
 0x11a   :  { %v264_v31 = vpop.f32.mrf.mxu0 }
 0x11b   :  { %v265_v32 = vadd.f32 %v1146_v13, %v264_v31  ;;  %v535_v33 = vpack.c.bf16 %v504_v30, %v503_v28 }
 0x11d   :  { %v316_v35 = vmax.f32 %v265_v32, 0.0  ;;  %979 = vmatmul.msk.bf16.vlgmr.msra.gmra.mxu2 %vm365_vm1, %v535_v33 }
 0x11e   :  { %v428_v36 = vpop.f32.mrf.mxu1 }
 0x11f   :  { %v338_v37 = vpack.c.bf16 %v316_v35, %v315_v34  ;;  %v429_v39 = vadd.f32 %v1212_v23, %v428_v36 }
 0x121   :  { %964 = vmatmul.msk.bf16.gmra.mxu1 %vm365_vm1, %v338_v37  ;;  %v505_v42 = vmax.f32 %v429_v39, 0.0 }
 0x122   :  { %v267_v38 = vpop.f32.mrf.mxu0 }
 0x123   :  { %v268_v43 = vadd.f32 %v1146_v13, %v267_v38 }
 0x125   :  { %v317_v48 = vmax.f32 %v268_v43, 0.0 }
 0x126   :  { %v430_v40 = vpop.f32.mrf.mxu1 }
 0x127   :  { %v431_v41 = vadd.f32 %v1212_v23, %v430_v40 }
 0x129   :  { %v506_v44 = vmax.f32 %v431_v41, 0.0 }
 0x12a   :  { %v269_v45 = vpop.f32.mrf.mxu0 }
 0x12b   :  { %v270_v46 = vadd.f32 %v1146_v13, %v269_v45  ;;  %v536_v47 = vpack.c.bf16 %v506_v44, %v505_v42 }
 0x12d   :  { %v318_v49 = vmax.f32 %v270_v46, 0.0  ;;  %980 = vmatmul.msk.bf16.gmra.mxu2 %vm365_vm1, %v536_v47 }
 0x12e   :  { %v433_v50 = vpop.f32.mrf.mxu1 }
 0x12f   :  { %v339_v51 = vpack.c.bf16 %v318_v49, %v317_v48  ;;  %v434_v53 = vadd.f32 %v1212_v23, %v433_v50 }
 0x131   :  { %965 = vmatmul.msk.bf16.gmra.mxu1 %vm365_vm1, %v339_v51  ;;  %v507_v56 = vmax.f32 %v434_v53, 0.0 }
 0x132   :  { %v272_v52 = vpop.f32.mrf.mxu0 }
 0x133   :  { %v273_v57 = vadd.f32 %v1146_v13, %v272_v52 }
 0x135   :  { %v319_v62 = vmax.f32 %v273_v57, 0.0 }
 0x136   :  { %v435_v54 = vpop.f32.mrf.mxu1 }
 0x137   :  { %v436_v55 = vadd.f32 %v1212_v23, %v435_v54 }
 0x139   :  { %v508_v58 = vmax.f32 %v436_v55, 0.0 }
 0x13a   :  { %v274_v59 = vpop.f32.mrf.mxu0 }
 0x13b   :  { %v275_v60 = vadd.f32 %v1146_v13, %v274_v59  ;;  %v537_v61 = vpack.c.bf16 %v508_v58, %v507_v56 }
 0x13d   :  { %v320_v63 = vmax.f32 %v275_v60, 0.0  ;;  %981 = vmatmul.msk.bf16.gmra.mxu2 %vm365_vm1, %v537_v61 }
 0x13e   :  { %v438_v0 = vpop.f32.mrf.mxu1 }
 0x13f   :  { %v340_v1 = vpack.c.bf16 %v320_v63, %v319_v62  ;;  %v439_v3 = vadd.f32 %v1212_v23, %v438_v0 }
 0x141   :  { %966 = vmatmul.msk.bf16.gmra.mxu1 %vm365_vm1, %v340_v1  ;;  %v509_v6 = vmax.f32 %v439_v3, 0.0 }
 0x142   :  { %v277_v2 = vpop.f32.mrf.mxu0 }
 0x143   :  { %v278_v7 = vadd.f32 %v1146_v13, %v277_v2 }
 0x145   :  { %v321_v12 = vmax.f32 %v278_v7, 0.0 }
 0x146   :  { %v440_v4 = vpop.f32.mrf.mxu1 }
 0x147   :  { %v441_v5 = vadd.f32 %v1212_v23, %v440_v4 }
 0x149   :  { %v510_v8 = vmax.f32 %v441_v5, 0.0 }
 0x14a   :  { %v279_v9 = vpop.f32.mrf.mxu0 }
 0x14b   :  { %v280_v10 = vadd.f32 %v1146_v13, %v279_v9  ;;  %v538_v11 = vpack.c.bf16 %v510_v8, %v509_v6 }
 0x14d   :  { %v322_v14 = vmax.f32 %v280_v10, 0.0  ;;  %982 = vmatmul.msk.bf16.gmra.mxu2 %vm365_vm1, %v538_v11  ;;  %v1266_v10 = vld [vmem:[%s1372_s6] ss:$0 sm:$0xff] }
 0x14e   :  { %v443_v15 = vpop.f32.mrf.mxu1 }
 0x14f   :  { %v341_v16 = vpack.c.bf16 %v322_v14, %v321_v12  ;;  %v444_v18 = vadd.f32 %v1212_v23, %v443_v15 }
 0x151   :  { %967 = vmatmul.msk.bf16.gmra.mxu1 %vm365_vm1, %v341_v16  ;;  %v511_v21 = vmax.f32 %v444_v18, 0.0 }
 0x152   :  { %v282_v17 = vpop.f32.mrf.mxu0 }
 0x153   :  { %v283_v22 = vadd.f32 %v1146_v13, %v282_v17 }
 0x155   :  { %v323_v28 = vmax.f32 %v283_v22, 0.0 }
 0x156   :  { %v445_v19 = vpop.f32.mrf.mxu1 }
 0x157   :  { %v446_v20 = vadd.f32 %v1212_v23, %v445_v19 }
 0x159   :  { %v512_v24 = vmax.f32 %v446_v20, 0.0 }
 0x15a   :  { %v284_v25 = vpop.f32.mrf.mxu0 }
 0x15b   :  { %v539_v26 = vpack.c.bf16 %v512_v24, %v511_v21  ;;  %v285_v27 = vadd.f32 %v1146_v13, %v284_v25 }
 0x15d   :  { %v324_v29 = vmax.f32 %v285_v27, 0.0  ;;  %983 = vmatmul.msk.bf16.gmra.mxu2 %vm365_vm1, %v539_v26 }
 0x15e   :  { %v448_v30 = vpop.f32.mrf.mxu1 }
 0x15f   :  { %v342_v31 = vpack.c.bf16 %v324_v29, %v323_v28  ;;  %v449_v33 = vadd.f32 %v1212_v23, %v448_v30 }
 0x161   :  { %968 = vmatmul.msk.bf16.gmra.mxu1 %vm365_vm1, %v342_v31  ;;  %v513_v36 = vmax.f32 %v449_v33, 0.0 }
 0x162   :  { %v287_v32 = vpop.f32.mrf.mxu0 }
 0x163   :  { %v288_v37 = vadd.f32 %v1146_v13, %v287_v32 }
 0x165   :  { %v325_v42 = vmax.f32 %v288_v37, 0.0 }
 0x166   :  { %v450_v34 = vpop.f32.mrf.mxu1 }
 0x167   :  { %v451_v35 = vadd.f32 %v1212_v23, %v450_v34 }
 0x169   :  { %v514_v38 = vmax.f32 %v451_v35, 0.0 }
 0x16a   :  { %v289_v39 = vpop.f32.mrf.mxu0 }
 0x16b   :  { %v540_v40 = vpack.c.bf16 %v514_v38, %v513_v36  ;;  %v290_v41 = vadd.f32 %v1146_v13, %v289_v39 }
 0x16d   :  { %v326_v43 = vmax.f32 %v290_v41, 0.0  ;;  %984 = vmatmul.msk.bf16.gmra.mxu2 %vm365_vm1, %v540_v40 }
 0x16e   :  { %v453_v44 = vpop.f32.mrf.mxu1 }
 0x16f   :  { %v343_v45 = vpack.c.bf16 %v326_v43, %v325_v42  ;;  %v454_v47 = vadd.f32 %v1212_v23, %v453_v44 }
 0x171   :  { %969 = vmatmul.msk.bf16.gmra.mxu1 %vm365_vm1, %v343_v45  ;;  %v515_v50 = vmax.f32 %v454_v47, 0.0 }
 0x172   :  { %v292_v46 = vpop.f32.mrf.mxu0 }
 0x173   :  { %v293_v51 = vadd.f32 %v1146_v13, %v292_v46 }
 0x175   :  { %v327_v56 = vmax.f32 %v293_v51, 0.0 }
 0x176   :  { %v455_v48 = vpop.f32.mrf.mxu1 }
 0x177   :  { %v456_v49 = vadd.f32 %v1212_v23, %v455_v48 }
 0x179   :  { %v516_v52 = vmax.f32 %v456_v49, 0.0 }
 0x17a   :  { %v294_v53 = vpop.f32.mrf.mxu0 }
 0x17b   :  { %v541_v54 = vpack.c.bf16 %v516_v52, %v515_v50  ;;  %v295_v55 = vadd.f32 %v1146_v13, %v294_v53 }
 0x17d   :  { %v328_v57 = vmax.f32 %v295_v55, 0.0  ;;  %985 = vmatmul.msk.bf16.gmra.mxu2 %vm365_vm1, %v541_v54 }
 0x17e   :  { %v458_v58 = vpop.f32.mrf.mxu1 }
 0x17f   :  { %v344_v59 = vpack.c.bf16 %v328_v57, %v327_v56  ;;  %v459_v60 = vadd.f32 %v1212_v23, %v458_v58 }
 0x181   :  { %970 = vmatmul.msk.bf16.gmra.mxu1 %vm365_vm1, %v344_v59  ;;  %v517_v63 = vmax.f32 %v459_v60, 0.0 }
 0x186   :  { %v460_v61 = vpop.f32.mrf.mxu1 }
 0x187   :  { %v461_v62 = vadd.f32 %v1212_v23, %v460_v61 }
 0x189   :  { %v518_v0 = vmax.f32 %v461_v62, 0.0 }
 0x18b   :  { %v542_v1 = vpack.c.bf16 %v518_v0, %v517_v63 }
 0x18d   :  { %986 = vmatmul.msk.bf16.gmra.mxu2 %vm365_vm1, %v542_v1 }
 0x18e   :  { %v463_v2 = vpop.f32.mrf.mxu1 }
 0x18f   :  { %v464_v13 = vadd.f32 %v1212_v23, %v463_v2 }
 0x191   :  { %v519_v5 = vmax.f32 %v464_v13, 0.0 }
 0x196   :  { %v465_v3 = vpop.f32.mrf.mxu1 }
 0x197   :  { %v466_v4 = vadd.f32 %v1212_v23, %v465_v3 }
 0x199   :  { %v520_v6 = vmax.f32 %v466_v4, 0.0 }
 0x19b   :  { %v543_v7 = vpack.c.bf16 %v520_v6, %v519_v5 }
 0x19d   :  { %987 = vmatmul.msk.bf16.gmra.mxu2 %vm365_vm1, %v543_v7 }
 0x19e   :  { %v468_v8 = vpop.f32.mrf.mxu1 }
 0x19f   :  { %v469_v11 = vadd.f32 %v1212_v23, %v468_v8 }
 0x1a0   :  { %v628_v9 = vpop.f32.mrf.mxu2 }
 0x1a1   :  { %v629_v14 = vadd.f32 %v1266_v10, %v628_v9  ;;  %v521_v17 = vmax.f32 %v469_v11, 0.0 }
 0x1a3   :  { %v708_v20 = vmax.f32 %v629_v14, 0.0 }
 0x1a6   :  { %v470_v12 = vpop.f32.mrf.mxu1 }
 0x1a7   :  { %v471_v15 = vadd.f32 %v1212_v23, %v470_v12 }
 0x1a8   :  { %v630_v16 = vpop.f32.mrf.mxu2 }
 0x1a9   :  { %v522_v18 = vmax.f32 %v471_v15, 0.0  ;;  %v631_v19 = vadd.f32 %v1266_v10, %v630_v16 }
 0x1ab   :  { %v544_v21 = vpack.c.bf16 %v522_v18, %v521_v17  ;;  %v709_v22 = vmax.f32 %v631_v19, 0.0 }
 0x1ad   :  { %988 = vmatmul.msk.bf16.gmra.mxu2 %vm365_vm1, %v544_v21  ;;  %v1273_v24 = vpack.c.bf16 %v709_v22, %v708_v20 }
 0x1ae   :  { %v473_v25 = vpop.f32.mrf.mxu1 }
 0x1af   :  { %v474_v27 = vadd.f32 %v1212_v23, %v473_v25 }
 0x1b0   :  { %v633_v26 = vpop.f32.mrf.mxu2 }
 0x1b1   :  { %v634_v29 = vadd.f32 %v1266_v10, %v633_v26  ;;  %v523_v32 = vmax.f32 %v474_v27, 0.0 }
 0x1b3   :  { %v710_v35 = vmax.f32 %v634_v29, 0.0 }
 0x1b6   :  { %v475_v28 = vpop.f32.mrf.mxu1 }
 0x1b7   :  { %v476_v30 = vadd.f32 %v1212_v23, %v475_v28 }
 0x1b8   :  { %v635_v31 = vpop.f32.mrf.mxu2 }
 0x1b9   :  { %v524_v33 = vmax.f32 %v476_v30, 0.0  ;;  %v636_v34 = vadd.f32 %v1266_v10, %v635_v31 }
 0x1bb   :  { %v545_v36 = vpack.c.bf16 %v524_v33, %v523_v32  ;;  %v711_v37 = vmax.f32 %v636_v34, 0.0 }
 0x1bd   :  { %989 = vmatmul.msk.bf16.gmra.mxu2 %vm365_vm1, %v545_v36  ;;  %v1280_v38 = vpack.c.bf16 %v711_v37, %v710_v35 }
 0x1be   :  { %v478_v39 = vpop.f32.mrf.mxu1 }
 0x1bf   :  { %v479_v41 = vadd.f32 %v1212_v23, %v478_v39 }
 0x1c0   :  { %v638_v40 = vpop.f32.mrf.mxu2 }
 0x1c1   :  { %v639_v43 = vadd.f32 %v1266_v10, %v638_v40  ;;  %v525_v46 = vmax.f32 %v479_v41, 0.0 }
 0x1c3   :  { %v712_v49 = vmax.f32 %v639_v43, 0.0 }
 0x1c6   :  { %v480_v42 = vpop.f32.mrf.mxu1 }
 0x1c7   :  { %v481_v44 = vadd.f32 %v1212_v23, %v480_v42 }
 0x1c8   :  { %v640_v45 = vpop.f32.mrf.mxu2 }
 0x1c9   :  { %v526_v47 = vmax.f32 %v481_v44, 0.0  ;;  %v641_v48 = vadd.f32 %v1266_v10, %v640_v45 }
 0x1cb   :  { %v546_v50 = vpack.c.bf16 %v526_v47, %v525_v46  ;;  %v713_v51 = vmax.f32 %v641_v48, 0.0 }
 0x1cd   :  { %990 = vmatmul.msk.bf16.gmra.mxu2 %vm365_vm1, %v546_v50  ;;  %v1287_v52 = vpack.c.bf16 %v713_v51, %v712_v49 }
 0x1ce   :  { %v483_v53 = vpop.f32.mrf.mxu1 }
 0x1cf   :  { %v484_v55 = vadd.f32 %v1212_v23, %v483_v53 }
 0x1d0   :  { %v643_v54 = vpop.f32.mrf.mxu2 }
 0x1d1   :  { %v644_v57 = vadd.f32 %v1266_v10, %v643_v54  ;;  %v527_v60 = vmax.f32 %v484_v55, 0.0 }
 0x1d3   :  { %v714_v63 = vmax.f32 %v644_v57, 0.0 }
 0x1d6   :  { %v485_v56 = vpop.f32.mrf.mxu1 }
 0x1d7   :  { %v486_v58 = vadd.f32 %v1212_v23, %v485_v56 }
 0x1d8   :  { %v645_v59 = vpop.f32.mrf.mxu2 }
 0x1d9   :  { %v528_v61 = vmax.f32 %v486_v58, 0.0  ;;  %v646_v62 = vadd.f32 %v1266_v10, %v645_v59 }
 0x1db   :  { %v547_v0 = vpack.c.bf16 %v528_v61, %v527_v60  ;;  %v715_v1 = vmax.f32 %v646_v62, 0.0 }
 0x1dd   :  { %991 = vmatmul.msk.bf16.gmra.mxu2 %vm365_vm1, %v547_v0  ;;  %v1294_v2 = vpack.c.bf16 %v715_v1, %v714_v63 }
 0x1de   :  { %v488_v13 = vpop.f32.mrf.mxu1 }
 0x1df   :  { %v489_v4 = vadd.f32 %v1212_v23, %v488_v13 }
 0x1e0   :  { %v648_v3 = vpop.f32.mrf.mxu2 }
 0x1e1   :  { %v649_v6 = vadd.f32 %v1266_v10, %v648_v3  ;;  %v529_v9 = vmax.f32 %v489_v4, 0.0 }
 0x1e3   :  { %v716_v14 = vmax.f32 %v649_v6, 0.0 }
 0x1e6   :  { %v490_v5 = vpop.f32.mrf.mxu1 }
 0x1e7   :  { %v491_v7 = vadd.f32 %v1212_v23, %v490_v5 }
 0x1e8   :  { %v650_v8 = vpop.f32.mrf.mxu2 }
 0x1e9   :  { %v530_v11 = vmax.f32 %v491_v7, 0.0  ;;  %v651_v12 = vadd.f32 %v1266_v10, %v650_v8 }
 0x1eb   :  { %v548_v15 = vpack.c.bf16 %v530_v11, %v529_v9  ;;  %v717_v16 = vmax.f32 %v651_v12, 0.0  ;;  %v772_v11 = vsel %vm365_vm1, %v1294_v2, 0 }
 0x1ed   :  { %992 = vmatmul.msk.bf16.gmra.mxu2 %vm365_vm1, %v548_v15  ;;  %v745_v17 = vpack.c.bf16 %v717_v16, %v716_v14  ;;  %v769_v15 = vsel %vm365_vm1, %v1287_v52, 0 }
 0x1ee   :  { %v493_v18 = vpop.f32.mrf.mxu1 }
 0x1ef   :  { %v494_v20 = vadd.f32 %v1212_v23, %v493_v18  ;;  %v775_v4 = vsel %vm365_vm1, %v745_v17, 0 }
 0x1f0   :  { %v653_v19 = vpop.f32.mrf.mxu2 }
 0x1f1   :  { %v531_v26 = vmax.f32 %v494_v20, 0.0  ;;  %v654_v54 = vadd.f32 %v1266_v10, %v653_v19 }
 0x1f3   :  { %v718_v59 = vmax.f32 %v654_v54, 0.0 }
 0x1f6   :  { %v495_v21 = vpop.f32.mrf.mxu1 }
 0x1f7   :  { %v496_v22 = vadd.f32 %v1212_v23, %v495_v21  ;;  %v766_v21 = vsel %vm365_vm1, %v1280_v38, 0 }
 0x1f8   :  { %v655_v25 = vpop.f32.mrf.mxu2 }
 0x1f9   :  { %v532_v27 = vmax.f32 %v496_v22, 0.0  ;;  %v656_v51 = vadd.f32 %v1266_v10, %v655_v25  ;;  %v763_v25 = vsel %vm365_vm1, %v1273_v24, 0 }
 0x1fb   :  { %v549_v28 = vpack.c.bf16 %v532_v27, %v531_v26  ;;  %v719_v55 = vmax.f32 %v656_v51, 0.0 }
 0x1fd   :  { %993 = vmatmul.msk.bf16.gmra.mxu2 %vm365_vm1, %v549_v28  ;;  %v746_v63 = vpack.c.bf16 %v719_v55, %v718_v59 }
 0x1fe   :  { %v498_v29 = vpop.f32.mrf.mxu1 }
 0x1ff   :  { %v499_v31 = vadd.f32 %v1212_v23, %v498_v29  ;;  %v778_v1 = vsel %vm365_vm1, %v746_v63, 0 }
 0x200   :  { %v658_v30 = vpop.f32.mrf.mxu2 }
 0x201   :  { %v533_v35 = vmax.f32 %v499_v31, 0.0  ;;  %v659_v46 = vadd.f32 %v1266_v10, %v658_v30 }
 0x203   :  { %v720_v50 = vmax.f32 %v659_v46, 0.0 }
 0x206   :  { %v500_v32 = vpop.f32.mrf.mxu1 }
 0x207   :  { %v501_v33 = vadd.f32 %v1212_v23, %v500_v32 }
 0x208   :  { %v660_v34 = vpop.f32.mrf.mxu2 }
 0x209   :  { %v534_v36 = vmax.f32 %v501_v33, 0.0  ;;  %v661_v43 = vadd.f32 %v1266_v10, %v660_v34 }
 0x20b   :  { %v550_v37 = vpack.c.bf16 %v534_v36, %v533_v35  ;;  %v721_v23 = vmax.f32 %v661_v43, 0.0 }
 0x20d   :  { %994 = vmatmul.msk.bf16.gmra.mxu2 %vm365_vm1, %v550_v37  ;;  %v747_v53 = vpack.c.bf16 %v721_v23, %v720_v50  ;;  %v740_v50 = vld [vmem:[%s1373_s7] sm:$0x1] }
 0x20f   :  { %v781_v57 = vsel %vm365_vm1, %v747_v53, 0 }
 0x210   :  { %v663_v39 = vpop.f32.mrf.mxu2 }
 0x211   :  { %v664_v40 = vadd.f32 %v1266_v10, %v663_v39 }
 0x213   :  { %v722_v44 = vmax.f32 %v664_v40, 0.0 }
 0x218   :  { %v665_v41 = vpop.f32.mrf.mxu2 }
 0x219   :  { %v666_v42 = vadd.f32 %v1266_v10, %v665_v41 }
 0x21b   :  { %v723_v45 = vmax.f32 %v666_v42, 0.0 }
 0x21d   :  { %v748_v47 = vpack.c.bf16 %v723_v45, %v722_v44 }
 0x21f   :  { %v784_v48 = vsel %vm365_vm1, %v748_v47, 0 }
 0x220   :  { %v668_v49 = vpop.f32.mrf.mxu2  ;;  %810 = vmatpush.bf16.xpose.msra.mxu3 %v784_v48 }
 0x221   :  { %v669_v56 = vadd.f32 %v1266_v10, %v668_v49 }
 0x223   :  { %v724_v61 = vmax.f32 %v669_v56, 0.0 }
 0x228   :  { %v670_v58 = vpop.f32.mrf.mxu2  ;;  %811 = vmatpush.bf16.xpose.msra.mxu3 %v781_v57 }
 0x229   :  { %v671_v60 = vadd.f32 %v1266_v10, %v670_v58 }
 0x22b   :  { %v725_v62 = vmax.f32 %v671_v60, 0.0 }
 0x22d   :  { %v1317_v0 = vpack.c.bf16 %v725_v62, %v724_v61 }
 0x230   :  { %v673_v13 = vpop.f32.mrf.mxu2  ;;  %812 = vmatpush.bf16.xpose.msra.mxu3 %v778_v1  ;;  %v787_v1 = vsel %vm365_vm1, %v1317_v0, 0 }
 0x231   :  { %v674_v3 = vadd.f32 %v1266_v10, %v673_v13 }
 0x233   :  { %v726_v7 = vmax.f32 %v674_v3, 0.0 }
 0x238   :  { %v675_v5 = vpop.f32.mrf.mxu2  ;;  %813 = vmatpush.bf16.xpose.msra.mxu3 %v775_v4  ;;  %v842_v4 = vlaneseq }
 0x239   :  { %v676_v6 = vadd.f32 %v1266_v10, %v675_v5  ;;  %v758_v5 = vstv %s1374_s8 }
 0x23a   :  { %vm844_vm3 = vcmp.lt.s32.totalorder %v842_v4, 256 }
 0x23b   :  { %v727_v8 = vmax.f32 %v676_v6, 0.0 }
 0x23d   :  { %v1323_v9 = vpack.c.bf16 %v727_v8, %v726_v7 }
 0x240   :  { %v678_v12 = vpop.f32.mrf.mxu2  ;;  %814 = vmatpush.bf16.xpose.msra.mxu3 %v772_v11 }
 0x241   :  { %v679_v14 = vadd.f32 %v1266_v10, %v678_v12 }
 0x243   :  { %v728_v18 = vmax.f32 %v679_v14, 0.0 }
 0x248   :  { %v680_v16 = vpop.f32.mrf.mxu2  ;;  %815 = vmatpush.bf16.xpose.msra.mxu3 %v769_v15 }
 0x249   :  { %v681_v17 = vadd.f32 %v1266_v10, %v680_v16 }
 0x24b   :  { %v729_v19 = vmax.f32 %v681_v17, 0.0 }
 0x24d   :  { %v751_v20 = vpack.c.bf16 %v729_v19, %v728_v18 }
 0x24f   :  { %v793_v63 = vsel %vm365_vm1, %v751_v20, 0 }
 0x250   :  { %v683_v22 = vpop.f32.mrf.mxu2  ;;  %816 = vmatpush.bf16.xpose.msra.mxu3 %v766_v21 }
 0x251   :  { %v684_v2 = vadd.f32 %v1266_v10, %v683_v22 }
 0x253   :  { %v730_v27 = vmax.f32 %v684_v2, 0.0 }
 0x258   :  { %v685_v26 = vpop.f32.mrf.mxu2  ;;  %817 = vmatpush.bf16.xpose.msra.mxu3 %v763_v25 }
 0x259   :  { %v686_v52 = vadd.f32 %v1266_v10, %v685_v26 }
 0x25b   :  { %v731_v28 = vmax.f32 %v686_v52, 0.0 }
 0x25d   :  { %v752_v29 = vpack.c.bf16 %v731_v28, %v730_v27 }
 0x25f   :  { %995 = vmatmul.msk.bf16.vlgmr.msra.gmra.mxu3 %vm365_vm1, %v740_v50  ;;  %v796_v62 = vsel %vm365_vm1, %v752_v29, 0 }
 0x260   :  { %v688_v30 = vpop.f32.mrf.mxu2 }
 0x261   :  { %v689_v31 = vadd.f32 %v1266_v10, %v688_v30 }
 0x263   :  { %v732_v33 = vmax.f32 %v689_v31, 0.0 }
 0x268   :  { %v690_v32 = vpop.f32.mrf.mxu2 }
 0x269   :  { %v691_v38 = vadd.f32 %v1266_v10, %v690_v32 }
 0x26b   :  { %v733_v34 = vmax.f32 %v691_v38, 0.0 }
 0x26d   :  { %v753_v35 = vpack.c.bf16 %v733_v34, %v732_v33 }
 0x26f   :  { %v799_v61 = vsel %vm365_vm1, %v753_v35, 0 }
 0x270   :  { %v693_v36 = vpop.f32.mrf.mxu2 }
 0x271   :  { %v694_v55 = vadd.f32 %v1266_v10, %v693_v36 }
 0x273   :  { %v734_v58 = vmax.f32 %v694_v55, 0.0 }
 0x278   :  { %v695_v37 = vpop.f32.mrf.mxu2 }
 0x279   :  { %v696_v53 = vadd.f32 %v1266_v10, %v695_v37 }
 0x27b   :  { %v735_v56 = vmax.f32 %v696_v53, 0.0 }
 0x27d   :  { %v754_v59 = vpack.c.bf16 %v735_v56, %v734_v58 }
 0x27f   :  { %v802_v60 = vsel %vm365_vm1, %v754_v59, 0 }
 0x280   :  { %v698_v39 = vpop.f32.mrf.mxu2 }
 0x281   :  { %v699_v47 = vadd.f32 %v1266_v10, %v698_v39 }
 0x283   :  { %v736_v51 = vmax.f32 %v699_v47, 0.0 }
 0x288   :  { %v700_v24 = vpop.f32.mrf.mxu2 }
 0x289   :  { %v701_v44 = vadd.f32 %v1266_v10, %v700_v24 }
 0x28b   :  { %v737_v48 = vmax.f32 %v701_v44, 0.0 }
 0x28d   :  { %v755_v54 = vpack.c.bf16 %v737_v48, %v736_v51 }
 0x28f   :  { %v805_v57 = vsel %vm365_vm1, %v755_v54, 0 }
 0x290   :  { %v703_v40 = vpop.f32.mrf.mxu2 }
 0x291   :  { %v704_v41 = vadd.f32 %v1266_v10, %v703_v40 }
 0x293   :  { %v738_v45 = vmax.f32 %v704_v41, 0.0 }
 0x298   :  { %v705_v42 = vpop.f32.mrf.mxu2 }
 0x299   :  { %v706_v43 = vadd.f32 %v1266_v10, %v705_v42  ;;  %v790_v10 = vsel %vm365_vm1, %v1323_v9, 0 }
 0x29b   :  { %v739_v46 = vmax.f32 %v706_v43, 0.0 }
 0x29d   :  { %v756_v23 = vpack.c.bf16 %v739_v46, %v738_v45 }
 0x29f   :  { %v808_v49 = vsel %vm365_vm1, %v756_v23, 0 }
 0x2a0   :  { %823 = vmatpush.bf16.xpose.msrb.mxu3 %v808_v49 }
 0x2a8   :  { %824 = vmatpush.bf16.xpose.msrb.mxu3 %v805_v57 }
 0x2b0   :  { %825 = vmatpush.bf16.xpose.msrb.mxu3 %v802_v60 }
 0x2b8   :  { %826 = vmatpush.bf16.xpose.msrb.mxu3 %v799_v61 }
 0x2c0   :  { %827 = vmatpush.bf16.xpose.msrb.mxu3 %v796_v62 }
 0x2c8   :  { %828 = vmatpush.bf16.xpose.msrb.mxu3 %v793_v63 }
 0x2d0   :  { %829 = vmatpush.bf16.xpose.msrb.mxu3 %v790_v10 }
 0x2d8   :  { %830 = vmatpush.bf16.xpose.msrb.mxu3 %v787_v1 }
 0x2df   :  { %996 = vmatmul.msk.bf16.vlgmr.msrb.gmra.mxu3 %vm365_vm1, %v740_v50 }
 0x2e2   :  { %v819_v13 = vpop.f32.mrf.mxu3 }
 0x2e3   :  { %v820_v0 = vadd.f32 %v819_v13, %v758_v5 }
 0x2ea   :  { %v821_v3 = vpop.f32.mrf.mxu3 }
 0x362   :  { %v832_v6 = vpop.f32.mrf.mxu3 }
 0x363   :  { %v833_v7 = vadd.f32 %v832_v6, %v758_v5 }
 0x365   :  { %v838_v8 = vrot.slane %v833_v7, 7 }
 0x367   :  { %v840_v9 = vsel %vm839_vm2, %v820_v0, %v838_v8 }
 0x368   :  { %846 = vst.msk [vmem:[#allocation3] sm:$0x3] %vm844_vm3, %v840_v9 }
 0x369   :  { %857 = dma.vmem_to_hbm [thread:$0]  %s853_s11, 32, %s855_s13, [#allocation4]  }
 0x36a   :  { %v834_v11 = vpop.f32.mrf.mxu3 }
 0x36b   :  { %1046 = dma.done.wait [#allocation4], 32  }
 0x36c   :  { %1047 = vsyncadd [#allocation4], 4294967264 }
 0x36d   :  { %862 = vsyncpa [#allocation4], 1 }

</bundles_post_ra>
